<compile_context>
chip_gen: v6e
topology: v6e:2x2x1
jax: 0.10.0
libtpu: 0.0.40
codegen_flags: <defaults>
</compile_context>

<pallas_src>
import math
import jax
import jax.numpy as jnp
from jax.experimental import pallas as pl
from jax.experimental.pallas import tpu as pltpu

B, S, D = 2, 8, 32      # batch, seq, d_model (size)
H = 4                   # attention heads
DH = D // H             # head dim
DFF = 64                # feed-forward hidden dim
N = B * S               # flattened token count
W3 = 3 * D              # packed-slab lane width (= fused QKV output width)

# Row offsets of each parameter inside the single packed weight slab.
# Every slab start is 8-row aligned so the in-kernel row loads are tile-aligned.
R_WQKV = 0              # (D,   3D)  rows   0:32   [Wq*scale | Wk | Wv]
R_BQKV = R_WQKV + D     # (1,   3D)  row   32      [bq*scale | bk | bv] (rows 33:40 zero pad)
R_WO1  = R_BQKV + 8     # (D,   3D)  rows  40:72   [Wo | W1]
R_BO1  = R_WO1 + D      # (1,   3D)  row   72      [bo | b1]
R_W2   = R_BO1 + 8      # (DFF,  D)  rows  80:144  W2 (lanes 32:96 zero pad)
R_B2   = R_W2 + DFF     # (1,    D)  row  144      b2
R_TOT  = R_B2 + 8       # 152 rows total  -> slab is (152, 96) f32  (~57 KB)

_FLOPS = (2 * N * D * (3 * D)              # fused QKV projection
          + 2 * (H * B) * S * S * DH * 2   # scores + PV
          + 2 * N * D * D                  # output projection
          + 2 * N * D * DFF                # FFN up
          + 2 * N * DFF * D)               # FFN down


def _each_layer_kernel(x_ref, w_ref, o_ref):
    x = x_ref[...]                                           # (N, D) f32

    # Static, tile-aligned row-window loads of the packed slab; column splits
    # are done on the loaded values (proven lowering path).
    wqkv = w_ref[R_WQKV:R_WQKV + D, :]                       # (D, 3D), Q cols pre-scaled
    bqkv = w_ref[R_BQKV:R_BQKV + 1, :]                       # (1, 3D)
    wo1 = w_ref[R_WO1:R_WO1 + D, :]                          # (D, 3D) = [Wo | W1]
    bo1 = w_ref[R_BO1:R_BO1 + 1, :]                          # (1, 3D) = [bo | b1]
    wo, w1 = wo1[:, :D], wo1[:, D:]
    bo, b1 = bo1[:, :D], bo1[:, D:]
    w2 = w_ref[R_W2:R_W2 + DFF, :][:, :D]                    # (DFF, D)
    b2 = w_ref[R_B2:R_B2 + 1, :][:, :D]                      # (1, D)

    # ---------- sublayer[0]: x + self_attn(minmax_norm(x)) ----------
    t_min = jnp.min(x)
    t_max = jnp.max(x)
    n1 = (x - t_min) * (1.0 / (t_max - t_min))               # hoisted reciprocal

    # Fused QKV projection: one (N,D)@(D,3D) matmul (scale folded into Q cols).
    qkv = jnp.dot(n1, wqkv, preferred_element_type=jnp.float32) + bqkv   # (N, 3D)
    qkv3 = qkv.reshape(B, S, W3)                             # leading-dim split only

    # Fold heads (and q/k/v) into the einsum batch dim in ONE concat:
    # chunk c = t*H + h  ->  all_f index = c*B + b, shape (3*H*B, S, DH).
    all_f = jnp.concatenate(
        [qkv3[:, :, c * DH:(c + 1) * DH] for c in range(3 * H)], axis=0)
    HB = H * B
    q_f, k_f, v_f = all_f[:HB], all_f[HB:2 * HB], all_f[2 * HB:]   # free leading splits

    s = jnp.einsum('bqd,bkd->bqk', q_f, k_f,
                   preferred_element_type=jnp.float32)       # (H*B, S, S), pre-scaled
    s = s - jnp.max(s, axis=-1, keepdims=True)               # stable softmax
    p = jnp.exp(s)
    p = p * pl.reciprocal(jnp.sum(p, axis=-1, keepdims=True), approx=False)
    o_f = jnp.einsum('bqk,bkd->bqd', p, v_f,
                     preferred_element_type=jnp.float32)     # (H*B, S, DH)

    # Un-fold heads back onto the feature (lane) axis, then output projection.
    attn = jnp.concatenate([o_f[h * B:(h + 1) * B] for h in range(H)], axis=-1)
    attn = attn.reshape(N, D)
    x1 = x + jnp.dot(attn, wo, preferred_element_type=jnp.float32) + bo

    # ---------- sublayer[1]: x1 + feed_forward(minmax_norm(x1)) ----------
    t_min2 = jnp.min(x1)
    t_max2 = jnp.max(x1)
    n2 = (x1 - t_min2) * (1.0 / (t_max2 - t_min2))
    h1 = jnp.maximum(jnp.dot(n2, w1, preferred_element_type=jnp.float32) + b1, 0.0)
    ff = jnp.dot(h1, w2, preferred_element_type=jnp.float32) + b2
    o_ref[...] = x1 + ff


def pack_params(params):
    """One-time packing of all layer weights into a single (R_TOT, 3D) slab."""
    wq, bq, wk, bk, wv, bv, wo, bo, w1, b1, w2, b2 = params
    scale = 1.0 / math.sqrt(DH)                       # fold attn scale into Q
    wqkv = jnp.concatenate([wq * scale, wk, wv], axis=1)      # (D, 3D)
    bqkv = jnp.concatenate([bq * scale, bk, bv], axis=1)      # (1, 3D)
    wo1 = jnp.concatenate([wo, w1], axis=1)                   # (D, 3D)
    bo1 = jnp.concatenate([bo, b1], axis=1)                   # (1, 3D)

    def pad(a, rows):
        return jnp.pad(a, ((0, rows - a.shape[0]), (0, W3 - a.shape[1])))

    slab = jnp.concatenate([
        pad(wqkv, D), pad(bqkv, 8),
        pad(wo1, D), pad(bo1, 8),
        pad(w2, DFF), pad(b2, 8),
    ], axis=0)
    assert slab.shape == (R_TOT, W3)
    return slab


def _forward(x, w_packed):
    x2d = x.reshape(N, D)          # wrapper-side reshape (free metadata)
    out2d = pl.pallas_call(
        _each_layer_kernel,
        out_shape=jax.ShapeDtypeStruct((N, D), jnp.float32),
        in_specs=[pl.BlockSpec(memory_space=pltpu.MemorySpace.VMEM),
                  pl.BlockSpec(memory_space=pltpu.MemorySpace.VMEM)],
        out_specs=pl.BlockSpec(memory_space=pltpu.MemorySpace.VMEM),
        cost_estimate=pl.CostEstimate(
            flops=_FLOPS,
            transcendentals=H * B * S * S,
            bytes_accessed=4 * (2 * N * D + R_TOT * W3)),
    )(x2d, w_packed)
    return out2d.reshape(B, S, D)


each_layer_forward = jax.jit(_forward)


def init_params(key):
    ks = jax.random.split(key, 12)
    sc = 0.05
    wq = sc * jax.random.normal(ks[0], (D, D), jnp.float32)
    bq = sc * jax.random.normal(ks[1], (1, D), jnp.float32)
    wk = sc * jax.random.normal(ks[2], (D, D), jnp.float32)
    bk = sc * jax.random.normal(ks[3], (1, D), jnp.float32)
    wv = sc * jax.random.normal(ks[4], (D, D), jnp.float32)
    bv = sc * jax.random.normal(ks[5], (1, D), jnp.float32)
    wo = sc * jax.random.normal(ks[6], (D, D), jnp.float32)
    bo = sc * jax.random.normal(ks[7], (1, D), jnp.float32)
    w1 = sc * jax.random.normal(ks[8], (D, DFF), jnp.float32)
    b1 = sc * jax.random.normal(ks[9], (1, DFF), jnp.float32)
    w2 = sc * jax.random.normal(ks[10], (DFF, D), jnp.float32)
    b2 = sc * jax.random.normal(ks[11], (1, D), jnp.float32)
    return (wq, bq, wk, bk, wv, bv, wo, bo, w1, b1, w2, b2)


def _reference(x, params):
    """Pure-JAX reference of the same forward pass (sanity check)."""
    wq, bq, wk, bk, wv, bv, wo, bo, w1, b1, w2, b2 = params

    def minmax(t):
        return (t - t.min()) / (t.max() - t.min())

    def mha(t):
        q = (t.reshape(N, D) @ wq + bq).reshape(B, S, H, DH).transpose(0, 2, 1, 3)
        k = (t.reshape(N, D) @ wk + bk).reshape(B, S, H, DH).transpose(0, 2, 1, 3)
        v = (t.reshape(N, D) @ wv + bv).reshape(B, S, H, DH).transpose(0, 2, 1, 3)
        s = jnp.einsum('bhqd,bhkd->bhqk', q, k) / math.sqrt(DH)
        p = jax.nn.softmax(s, axis=-1)
        o = jnp.einsum('bhqk,bhkd->bhqd', p, v).transpose(0, 2, 1, 3).reshape(N, D)
        return (o @ wo + bo).reshape(B, S, D)

    def ffn(t):
        h1 = jnp.maximum(t.reshape(N, D) @ w1 + b1, 0.0)
        return (h1 @ w2 + b2).reshape(B, S, D)

    x1 = x + mha(minmax(x))
    return x1 + ffn(minmax(x1))


if __name__ == "__main__":
    key = jax.random.PRNGKey(0)
    kx, kp = jax.random.split(key)
    x = jax.random.normal(kx, (B, S, D), jnp.float32)
    params = init_params(kp)

    # One-time weight packing (init-time, NOT in the per-call path).
    w_packed = jax.block_until_ready(pack_params(params))

    out = each_layer_forward(x, w_packed)
    out = jax.block_until_ready(out)

    ref = _reference(x, params)
    assert out.shape == (B, S, D)
    assert jnp.allclose(out, ref, atol=1e-4, rtol=1e-4)
    print("KERNEL_OK")
</pallas_src>

<mosaic_0001>
module attributes {stable_mosaic.version = 11 : i64} {
  func.func @_each_layer_kernel(%arg0: memref<16x32xf32, #tpu.memory_space<vmem>>, %arg1: memref<152x96xf32, #tpu.memory_space<vmem>>, %arg2: memref<16x32xf32, #tpu.memory_space<vmem>>) attributes {dimension_semantics = [], scalar_prefetch = 0 : i64, scratch_operands = 0 : i64, tpu.core_type = #tpu.core_type<tc>} {
    %c0 = arith.constant 0 : index
    %c0_0 = arith.constant 0 : index
    %0 = vector.load %arg0[%c0, %c0_0] : memref<16x32xf32, #tpu.memory_space<vmem>>, vector<16x32xf32>
    %c0_1 = arith.constant 0 : index
    %c0_2 = arith.constant 0 : index
    %1 = vector.load %arg1[%c0_1, %c0_2] : memref<152x96xf32, #tpu.memory_space<vmem>>, vector<32x96xf32>
    %c32 = arith.constant 32 : index
    %c0_3 = arith.constant 0 : index
    %2 = vector.load %arg1[%c32, %c0_3] : memref<152x96xf32, #tpu.memory_space<vmem>>, vector<1x96xf32>
    %c40 = arith.constant 40 : index
    %c0_4 = arith.constant 0 : index
    %3 = vector.load %arg1[%c40, %c0_4] : memref<152x96xf32, #tpu.memory_space<vmem>>, vector<32x96xf32>
    %c72 = arith.constant 72 : index
    %c0_5 = arith.constant 0 : index
    %4 = vector.load %arg1[%c72, %c0_5] : memref<152x96xf32, #tpu.memory_space<vmem>>, vector<1x96xf32>
    %5 = vector.extract_strided_slice %3 {offsets = [0, 0], sizes = [32, 32], strides = [1, 1]} : vector<32x96xf32> to vector<32x32xf32>
    %6 = vector.extract_strided_slice %3 {offsets = [0, 32], sizes = [32, 64], strides = [1, 1]} : vector<32x96xf32> to vector<32x64xf32>
    %7 = vector.extract_strided_slice %4 {offsets = [0, 0], sizes = [1, 32], strides = [1, 1]} : vector<1x96xf32> to vector<1x32xf32>
    %8 = vector.extract_strided_slice %4 {offsets = [0, 32], sizes = [1, 64], strides = [1, 1]} : vector<1x96xf32> to vector<1x64xf32>
    %c80 = arith.constant 80 : index
    %c0_6 = arith.constant 0 : index
    %9 = vector.load %arg1[%c80, %c0_6] : memref<152x96xf32, #tpu.memory_space<vmem>>, vector<64x96xf32>
    %10 = vector.extract_strided_slice %9 {offsets = [0, 0], sizes = [64, 32], strides = [1, 1]} : vector<64x96xf32> to vector<64x32xf32>
    %c144 = arith.constant 144 : index
    %c0_7 = arith.constant 0 : index
    %11 = vector.load %arg1[%c144, %c0_7] : memref<152x96xf32, #tpu.memory_space<vmem>>, vector<1x96xf32>
    %12 = vector.extract_strided_slice %11 {offsets = [0, 0], sizes = [1, 32], strides = [1, 1]} : vector<1x96xf32> to vector<1x32xf32>
    %13 = vector.shape_cast %0 : vector<16x32xf32> to vector<1x16x32xf32>
    %cst = arith.constant dense<0x7F800000> : vector<1xf32>
    %14 = vector.multi_reduction <minimumf>, %13, %cst [1, 2] : vector<1x16x32xf32> to vector<1xf32>
    %15 = vector.shape_cast %14 : vector<1xf32> to vector<1x1x1xf32>
    %16 = vector.extract %15[0, 0, 0] : f32 from vector<1x1x1xf32>
    %17 = vector.shape_cast %0 : vector<16x32xf32> to vector<1x16x32xf32>
    %cst_8 = arith.constant dense<0xFF800000> : vector<1xf32>
    %18 = vector.multi_reduction <maximumf>, %17, %cst_8 [1, 2] : vector<1x16x32xf32> to vector<1xf32>
    %19 = vector.shape_cast %18 : vector<1xf32> to vector<1x1x1xf32>
    %20 = vector.extract %19[0, 0, 0] : f32 from vector<1x1x1xf32>
    %21 = vector.broadcast %16 : f32 to vector<16x32xf32>
    %22 = arith.subf %0, %21 : vector<16x32xf32>
    %23 = arith.subf %20, %16 : f32
    %cst_9 = arith.constant 1.000000e+00 : f32
    %24 = arith.divf %cst_9, %23 : f32
    %25 = vector.broadcast %24 : f32 to vector<16x32xf32>
    %26 = arith.mulf %22, %25 : vector<16x32xf32>
    %cst_10 = arith.constant dense<0.000000e+00> : vector<16x96xf32>
    %27 = tpu.matmul %26, %1, %cst_10 {dimension_numbers = #tpu.dot_dimension_numbers<[1], [0], [0], [1], [0, 0, 1, 1], [], []>} : vector<16x32xf32>, vector<32x96xf32>, vector<16x96xf32> -> vector<16x96xf32>
    %28 = vector.broadcast %2 : vector<1x96xf32> to vector<16x96xf32>
    %29 = arith.addf %27, %28 : vector<16x96xf32>
    %30 = vector.shape_cast %29 : vector<16x96xf32> to vector<2x8x96xf32>
    %31 = vector.extract_strided_slice %30 {offsets = [0, 0, 0], sizes = [2, 8, 8], strides = [1, 1, 1]} : vector<2x8x96xf32> to vector<2x8x8xf32>
    %32 = vector.extract_strided_slice %30 {offsets = [0, 0, 8], sizes = [2, 8, 8], strides = [1, 1, 1]} : vector<2x8x96xf32> to vector<2x8x8xf32>
    %33 = vector.extract_strided_slice %30 {offsets = [0, 0, 16], sizes = [2, 8, 8], strides = [1, 1, 1]} : vector<2x8x96xf32> to vector<2x8x8xf32>
    %34 = vector.extract_strided_slice %30 {offsets = [0, 0, 24], sizes = [2, 8, 8], strides = [1, 1, 1]} : vector<2x8x96xf32> to vector<2x8x8xf32>
    %35 = vector.extract_strided_slice %30 {offsets = [0, 0, 32], sizes = [2, 8, 8], strides = [1, 1, 1]} : vector<2x8x96xf32> to vector<2x8x8xf32>
    %36 = vector.extract_strided_slice %30 {offsets = [0, 0, 40], sizes = [2, 8, 8], strides = [1, 1, 1]} : vector<2x8x96xf32> to vector<2x8x8xf32>
    %37 = vector.extract_strided_slice %30 {offsets = [0, 0, 48], sizes = [2, 8, 8], strides = [1, 1, 1]} : vector<2x8x96xf32> to vector<2x8x8xf32>
    %38 = vector.extract_strided_slice %30 {offsets = [0, 0, 56], sizes = [2, 8, 8], strides = [1, 1, 1]} : vector<2x8x96xf32> to vector<2x8x8xf32>
    %39 = vector.extract_strided_slice %30 {offsets = [0, 0, 64], sizes = [2, 8, 8], strides = [1, 1, 1]} : vector<2x8x96xf32> to vector<2x8x8xf32>
    %40 = vector.extract_strided_slice %30 {offsets = [0, 0, 72], sizes = [2, 8, 8], strides = [1, 1, 1]} : vector<2x8x96xf32> to vector<2x8x8xf32>
    %41 = vector.extract_strided_slice %30 {offsets = [0, 0, 80], sizes = [2, 8, 8], strides = [1, 1, 1]} : vector<2x8x96xf32> to vector<2x8x8xf32>
    %42 = vector.extract_strided_slice %30 {offsets = [0, 0, 88], sizes = [2, 8, 8], strides = [1, 1, 1]} : vector<2x8x96xf32> to vector<2x8x8xf32>
    %43 = tpu.concatenate %31, %32, %33, %34, %35, %36, %37, %38, %39, %40, %41, %42 in 0 : vector<2x8x8xf32>, vector<2x8x8xf32>, vector<2x8x8xf32>, vector<2x8x8xf32>, vector<2x8x8xf32>, vector<2x8x8xf32>, vector<2x8x8xf32>, vector<2x8x8xf32>, vector<2x8x8xf32>, vector<2x8x8xf32>, vector<2x8x8xf32>, vector<2x8x8xf32> -> vector<24x8x8xf32>
    %44 = vector.extract_strided_slice %43 {offsets = [0, 0, 0], sizes = [8, 8, 8], strides = [1, 1, 1]} : vector<24x8x8xf32> to vector<8x8x8xf32>
    %45 = vector.extract_strided_slice %43 {offsets = [8, 0, 0], sizes = [8, 8, 8], strides = [1, 1, 1]} : vector<24x8x8xf32> to vector<8x8x8xf32>
    %46 = vector.extract_strided_slice %43 {offsets = [16, 0, 0], sizes = [8, 8, 8], strides = [1, 1, 1]} : vector<24x8x8xf32> to vector<8x8x8xf32>
    "tpu.trace_start"() <{level = 10 : i32, message = "bqd,bkd->bqk"}> : () -> ()
    %cst_11 = arith.constant dense<0.000000e+00> : vector<8x8x8xf32>
    %47 = tpu.matmul %44, %45, %cst_11 {dimension_numbers = #tpu.dot_dimension_numbers<[2], [2], [1], [1], [0, 0, 0, 1, 1, 1], [0], [0]>} : vector<8x8x8xf32>, vector<8x8x8xf32>, vector<8x8x8xf32> -> vector<8x8x8xf32>
    "tpu.trace_stop"() : () -> ()
    %cst_12 = arith.constant dense<0xFF800000> : vector<8x8xf32>
    %48 = vector.multi_reduction <maximumf>, %47, %cst_12 [2] : vector<8x8x8xf32> to vector<8x8xf32>
    %49 = vector.shape_cast %48 : vector<8x8xf32> to vector<8x8x1xf32>
    %50 = vector.broadcast %49 : vector<8x8x1xf32> to vector<8x8x8xf32>
    %51 = arith.subf %47, %50 : vector<8x8x8xf32>
    %52 = math.exp %51 : vector<8x8x8xf32>
    %cst_13 = arith.constant dense<0.000000e+00> : vector<8x8xf32>
    %53 = vector.multi_reduction <add>, %52, %cst_13 [2] : vector<8x8x8xf32> to vector<8x8xf32>
    %54 = vector.shape_cast %53 : vector<8x8xf32> to vector<8x8x1xf32>
    %55 = tpu.reciprocal %54 : vector<8x8x1xf32> -> vector<8x8x1xf32>
    %56 = vector.broadcast %55 : vector<8x8x1xf32> to vector<8x8x8xf32>
    %57 = arith.mulf %52, %56 : vector<8x8x8xf32>
    "tpu.trace_start"() <{level = 10 : i32, message = "bqk,bkd->bqd"}> : () -> ()
    %cst_14 = arith.constant dense<0.000000e+00> : vector<8x8x8xf32>
    %58 = tpu.matmul %57, %46, %cst_14 {dimension_numbers = #tpu.dot_dimension_numbers<[2], [1], [1], [2], [0, 0, 0, 1, 1, 2], [0], [0]>} : vector<8x8x8xf32>, vector<8x8x8xf32>, vector<8x8x8xf32> -> vector<8x8x8xf32>
    "tpu.trace_stop"() : () -> ()
    %59 = vector.extract_strided_slice %58 {offsets = [0, 0, 0], sizes = [2, 8, 8], strides = [1, 1, 1]} : vector<8x8x8xf32> to vector<2x8x8xf32>
    %60 = vector.extract_strided_slice %58 {offsets = [2, 0, 0], sizes = [2, 8, 8], strides = [1, 1, 1]} : vector<8x8x8xf32> to vector<2x8x8xf32>
    %61 = vector.extract_strided_slice %58 {offsets = [4, 0, 0], sizes = [2, 8, 8], strides = [1, 1, 1]} : vector<8x8x8xf32> to vector<2x8x8xf32>
    %62 = vector.extract_strided_slice %58 {offsets = [6, 0, 0], sizes = [2, 8, 8], strides = [1, 1, 1]} : vector<8x8x8xf32> to vector<2x8x8xf32>
    %63 = tpu.concatenate %59, %60, %61, %62 in 2 : vector<2x8x8xf32>, vector<2x8x8xf32>, vector<2x8x8xf32>, vector<2x8x8xf32> -> vector<2x8x32xf32>
    %64 = vector.shape_cast %63 : vector<2x8x32xf32> to vector<16x32xf32>
    %cst_15 = arith.constant dense<0.000000e+00> : vector<16x32xf32>
    %65 = tpu.matmul %64, %5, %cst_15 {dimension_numbers = #tpu.dot_dimension_numbers<[1], [0], [0], [1], [0, 0, 1, 1], [], []>} : vector<16x32xf32>, vector<32x32xf32>, vector<16x32xf32> -> vector<16x32xf32>
    %66 = arith.addf %0, %65 : vector<16x32xf32>
    %67 = vector.broadcast %7 : vector<1x32xf32> to vector<16x32xf32>
    %68 = arith.addf %66, %67 : vector<16x32xf32>
    %69 = vector.shape_cast %68 : vector<16x32xf32> to vector<1x16x32xf32>
    %cst_16 = arith.constant dense<0x7F800000> : vector<1xf32>
    %70 = vector.multi_reduction <minimumf>, %69, %cst_16 [1, 2] : vector<1x16x32xf32> to vector<1xf32>
    %71 = vector.shape_cast %70 : vector<1xf32> to vector<1x1x1xf32>
    %72 = vector.extract %71[0, 0, 0] : f32 from vector<1x1x1xf32>
    %73 = vector.shape_cast %68 : vector<16x32xf32> to vector<1x16x32xf32>
    %cst_17 = arith.constant dense<0xFF800000> : vector<1xf32>
    %74 = vector.multi_reduction <maximumf>, %73, %cst_17 [1, 2] : vector<1x16x32xf32> to vector<1xf32>
    %75 = vector.shape_cast %74 : vector<1xf32> to vector<1x1x1xf32>
    %76 = vector.extract %75[0, 0, 0] : f32 from vector<1x1x1xf32>
    %77 = vector.broadcast %72 : f32 to vector<16x32xf32>
    %78 = arith.subf %68, %77 : vector<16x32xf32>
    %79 = arith.subf %76, %72 : f32
    %cst_18 = arith.constant 1.000000e+00 : f32
    %80 = arith.divf %cst_18, %79 : f32
    %81 = vector.broadcast %80 : f32 to vector<16x32xf32>
    %82 = arith.mulf %78, %81 : vector<16x32xf32>
    %cst_19 = arith.constant dense<0.000000e+00> : vector<16x64xf32>
    %83 = tpu.matmul %82, %6, %cst_19 {dimension_numbers = #tpu.dot_dimension_numbers<[1], [0], [0], [1], [0, 0, 1, 1], [], []>} : vector<16x32xf32>, vector<32x64xf32>, vector<16x64xf32> -> vector<16x64xf32>
    %84 = vector.broadcast %8 : vector<1x64xf32> to vector<16x64xf32>
    %85 = arith.addf %83, %84 : vector<16x64xf32>
    %cst_20 = arith.constant 0.000000e+00 : f32
    %86 = vector.broadcast %cst_20 : f32 to vector<16x64xf32>
    %87 = arith.maximumf %85, %86 : vector<16x64xf32>
    %cst_21 = arith.constant dense<0.000000e+00> : vector<16x32xf32>
    %88 = tpu.matmul %87, %10, %cst_21 {dimension_numbers = #tpu.dot_dimension_numbers<[1], [0], [0], [1], [0, 0, 1, 1], [], []>} : vector<16x64xf32>, vector<64x32xf32>, vector<16x32xf32> -> vector<16x32xf32>
    %89 = vector.broadcast %12 : vector<1x32xf32> to vector<16x32xf32>
    %90 = arith.addf %88, %89 : vector<16x32xf32>
    %91 = arith.addf %68, %90 : vector<16x32xf32>
    %c0_22 = arith.constant 0 : index
    %c0_23 = arith.constant 0 : index
    %92 = vector.load %arg2[%c0_22, %c0_23] : memref<16x32xf32, #tpu.memory_space<vmem>>, vector<16x32xf32>
    tpu.vector_store %arg2[%c0_22, %c0_23], %91 {strides = array<i32>} : memref<16x32xf32, #tpu.memory_space<vmem>>, vector<16x32xf32>,
    return
  }
}

</mosaic_0001>

<bundles_post_ra>
// kernel: _forward.1
= control target key start
LH: loop header
LB: loop body
LE: loop exit
PB: predicated region body
PF: predicated region fallthrough
CT: control target
= control target key end

     0   :  { %7 = vsyncpa [#allocation3], 0  ;;  %s2465_s0 = inlined_call_operand.hbm [shape: f32[16,32], index: 0, kind: input, shape index: {}]   ;;  %s2466_s1 = inlined_call_operand.hbm [shape: f32[152,96], index: 1, kind: input, shape index: {}]   ;;  %s2467_s2 = inlined_call_operand.hbm [shape: f32[16,32], index: 2, kind: output, shape index: {}]  }
   0x1   :  { %8 = vsyncpa [#allocation6], 0 }
   0x2   :  { %9 = vsyncpa [#allocation4], 0  ;;  %s2227_s9 = smov [#allocation2]  }
   0x3   :  { %s15_s10 = sshll.u32 %s2227_s9, 4  ;;  %s16_s10 = int_to_ptr.vmem [resolvable:$true] %s15_s10 }
   0x4   :  { %s2169_s11 = scalar_lea.vmem %s16_s10, 256  ;;  %p2174_p1 = scmp.lt.s32.totalorder %s16_s10, %s16_s10 }
   0x5   :  { %p2170_p0 = scmp.ne.s32.totalorder %s16_s10, %s2169_s11  ;;  %p2175_p2 = scmp.lt.s32.totalorder %s2169_s11, %s2169_s11 }
   0x7   :  { %p2176_p3 = por %p2175_p2, %p2174_p1 }
   0x9   :  { %p2177_p4 = pnand %p2176_p3, %p2170_p0 }
   0xb   :  { %2180 = shalt.err (!%p2177_p4)
}
   0xc   :  { %s2228_s12 = smov 128   ;;  %s2229_s13 = smov 8  }
   0xd   :  { %21 = dma.hbm_to_vmem [thread:$0]  %s2465_s0, 256, %s16_s10, [#allocation3], %s2228_s12, %s2228_s12, %s2229_s13  }
   0xe   :  { %s2230_s16 = smov [#allocation5]  }
   0xf   :  { %s27_s17 = sshll.u32 %s2230_s16, 4  ;;  %s28_s17 = int_to_ptr.vmem [resolvable:$true] %s27_s17 }
  0x10   :  { %s2189_s18 = scalar_lea.vmem %s28_s17, 2432  ;;  %p2194_p6 = scmp.lt.s32.totalorder %s28_s17, %s28_s17 }
  0x11   :  { %p2190_p5 = scmp.ne.s32.totalorder %s28_s17, %s2189_s18  ;;  %p2195_p7 = scmp.lt.s32.totalorder %s2189_s18, %s2189_s18 }
  0x13   :  { %p2196_p8 = por %p2195_p7, %p2194_p6 }
  0x15   :  { %p2197_p9 = pnand %p2196_p8, %p2190_p5 }
  0x17   :  { %2200 = shalt.err (!%p2197_p9)
}
  0x18   :  { %33 = dma.hbm_to_vmem [thread:$0]  %s2466_s1, 2432, %s28_s17, [#allocation6], %s2228_s12, %s2228_s12, %s2229_s13  }
  0x19   :  { %2221 = dma.done.wait [#allocation3], 256  }
  0x1a   :  { %2222 = vsyncadd [#allocation3], 4294967040 }
  0x1b   :  { %2223 = dma.done.wait [#allocation6], 2432  }
  0x1c   :  { %2224 = vsyncadd [#allocation6], 4294964864  ;;  %vm61_vm0 = vcmask 261120   ;;  %v2274_v0 = vld [vmem:[#allocation2] sm:$0xff]  ;;  %v2276_v1 = vld [vmem:[#allocation2 + $0x8] sm:$0xff]  ;;  %v2231_v34 = vmov 0.0  }
  0x1d   :  { %v62_v2 = vsel %vm61_vm0, %v2274_v0, inf  ;;  %v63_v3 = vsel %vm61_vm0, %v2276_v1, inf  ;;  %v74_v4 = vsel %vm61_vm0, %v2274_v0, -inf  ;;  %v75_v5 = vsel %vm61_vm0, %v2276_v1, -inf  ;;  %v45_v8 = vld [vmem:[#allocation5 + $0x18] sm:$0xff]  ;;  %v44_v9 = vld [vmem:[#allocation5 + $0x10] sm:$0xff]  ;;  %1982 = vmatprep.subr.mxu0 %v2231_v34 }
  0x1e   :  { %v64_v6 = vmin.f32 %v62_v2, %v63_v3  ;;  %v76_v7 = vmax.f32 %v74_v4, %v75_v5  ;;  %1961 = vmatprep.subr.mxu1 %v45_v8  ;;  %v43_v16 = vld [vmem:[#allocation5 + $0x8] sm:$0xff]  ;;  %v42_v19 = vld [vmem:[#allocation5] sm:$0xff]  ;;  %s2232_s23 = smov 96   ;;  %s2233_s24 = smov 88   ;;  %vm2234_vm1 = vmmov 0   ;;  %vm235_vm2 = vcmask 64512  }
  0x1f   :  { %1962 = vmatpush3.msra.mxu1 %v45_v8  ;;  %v1866_v35 = vld [vmem:[#allocation5 + $0x20] ss:$0 sm:$0xff]  ;;  %1984 = vmatprep.mubr.msk.f32.mxu0 %vm2234_vm1, %v2231_v34  ;;  %s2235_s25 = smov 112   ;;  %s2236_s26 = smov 120   ;;  %vm1526_vm3 = vcmask 130048   ;;  %vm1529_vm4 = vcmask 195584  }
  0x20   :  { %65 = vmin.xlane.f32.xlu0 %v64_v6  ;;  %1963 = vmatprep.subr.mxu1 %v44_v9  ;;  %s2237_s27 = smov 72   ;;  %s2238_s28 = smov 80   ;;  %vm1762_vm5 = vcmask 523264  }
  0x21   :  { %1964 = vmatpush3.msra.mxu1 %v44_v9  ;;  %s2239_s29 = smov 104   ;;  %s2240_s30 = smov 64  }
  0x22   :  { %1965 = vmatprep.subr.mxu1 %v43_v16  ;;  %s2241_s3 = smov 56   ;;  %s2242_s4 = smov 48  }
  0x23   :  { %1966 = vmatpush3.msra.mxu1 %v43_v16  ;;  %s2243_s5 = smov 40   ;;  %s2244_s6 = smov 16  }
  0x24   :  { %77 = vmax.xlane.f32.xlu0 %v76_v7  ;;  %1967 = vmatprep.subr.mxu1 %v42_v19  ;;  %s2245_s7 = smov 24   ;;  %s2246_s14 = smov [#allocation7]  }
  0x25   :  { %1968 = vmatpush3.msra.mxu1 %v42_v19  ;;  %s1853_s15 = sshll.u32 %s2246_s14, 4  ;;  %s1854_s15 = int_to_ptr.vmem [resolvable:$true] %s1853_s15 }
  0x26   :  { %1972 = vmatprep.subr.mxu1 %v2231_v34  ;;  %s2201_s16 = scalar_lea.vmem %s1854_s15, 256  ;;  %p2206_p11 = scmp.lt.s32.totalorder %s1854_s15, %s1854_s15 }
  0x27   :  { %p2202_p10 = scmp.ne.s32.totalorder %s1854_s15, %s2201_s16  ;;  %p2207_p12 = scmp.lt.s32.totalorder %s2201_s16, %s2201_s16 }
  0x29   :  { %p2208_p13 = por %p2207_p12, %p2206_p11 }
  0x2b   :  { %p2209_p0 = pnand %p2208_p13, %p2202_p10 }
  0xa9   :  { %v66_v10 = vpop.xlane.xlu0 %65 }
  0xaa   :  { %v67_v11 = vrot.slane %v66_v10, 4 }
  0xac   :  { %v68_v12 = vmin.f32 %v66_v10, %v67_v11 }
  0xad   :  { %v78_v13 = vpop.xlane.xlu0 %77 }
  0xae   :  { %v69_v14 = vrot.slane %v68_v12, 2  ;;  %v79_v15 = vrot.slane %v78_v13, 4 }
  0xb0   :  { %v80_v17 = vmax.f32 %v78_v13, %v79_v15  ;;  %v70_v18 = vmin.f32 %v68_v12, %v69_v14 }
  0xb2   :  { %v81_v20 = vrot.slane %v80_v17, 2  ;;  %v71_v21 = vrot.slane %v70_v18, 1 }
  0xb4   :  { %v72_v22 = vmin.f32 %v70_v18, %v71_v21  ;;  %v82_v23 = vmax.f32 %v80_v17, %v81_v20 }
  0xb6   :  { %2093 = vpush %v72_v22  ;;  %v83_v24 = vrot.slane %v82_v23, 1 }
  0xb8   :  { %v84_v25 = vmax.f32 %v82_v23, %v83_v24 }
  0xba   :  { %2095 = vpush %v84_v25 }
  0xe7   :  { %s2094_s0 = spop %2093 }
  0xe8   :  { %v86_v28 = vstv %s2094_s0 }
  0xe9   :  { %v87_v29 = vsub.f32 %v2274_v0, %v86_v28  ;;  %v88_v30 = vsub.f32 %v2276_v1, %v86_v28 }
  0xeb   :  { %s2096_s1 = spop %2095 }
  0xec   :  { %s89_s21 = ssub.f32 %s2096_s1, %s2094_s0 }
  0xee   :  { %v90_v26 = vstv %s89_s21 }
  0xef   :  { %2125 = vrcp.f32 %v90_v26 }
  0xfc   :  { %v2126_v27 = vpop.eup %2125 }
  0xfd   :  { %2097 = vpush %v2126_v27 }
 0x12e   :  { %s2098_s22 = spop %2097 }
 0x12f   :  { %v93_v31 = vstv %s2098_s22 }
 0x130   :  { %v95_v32 = vmul.f32 %v93_v31, %v88_v30  ;;  %v94_v33 = vmul.f32 %v93_v31, %v87_v29 }
 0x132   :  { %1969 = vmatprep.mubr.msk.f32.mxu1 %vm61_vm0, %v94_v33 }
 0x133   :  { %1970 = vmatmul.mubr.msk.f32.vlgmr.msra.gmra.mxu1 %vm61_vm0, %v95_v32 }
 0x134   :  { %1974 = vmatprep.mubr.msk.f32.mxu1 %vm2234_vm1, %v2231_v34 }
 0x1f3   :  { %v1971_v36 = vpop.f32.mrf.mxu1 }
 0x1f4   :  { %v2292_v37 = vadd.f32 %v1971_v36, %v1866_v35 }
 0x1f5   :  { %v172_v38 = vpop.f32.mrf.mxu1 }
 0x1f6   :  { %v2294_v39 = vadd.f32 %v1866_v35, %v172_v38  ;;  %197 = vrot.lane.b32.xlu1 %v2292_v37, %s2232_s23 }
 0x1f8   :  { %199 = vrot.lane.b32.xlu0 %v2294_v39, %s2233_s24 }
 0x1fa   :  { %201 = vrot.lane.b32.xlu1 %v2292_v37, %s2233_s24 }
 0x1fc   :  { %189 = vrot.lane.b32.xlu0 %v2292_v37, %s2235_s25 }
 0x1fe   :  { %185 = vrot.lane.b32.xlu1 %v2292_v37, %s2236_s26 }
 0x200   :  { %209 = vrot.lane.b32.xlu0 %v2292_v37, %s2237_s27 }
 0x202   :  { %205 = vrot.lane.b32.xlu1 %v2292_v37, %s2238_s28 }
 0x204   :  { %193 = vrot.lane.b32.xlu0 %v2292_v37, %s2239_s29 }
 0x206   :  { %195 = vrot.lane.b32.xlu1 %v2294_v39, %s2232_s23 }
 0x20a   :  { %183 = vrot.lane.b32.xlu1 %v2294_v39, %s2236_s26 }
 0x20e   :  { %203 = vrot.lane.b32.xlu1 %v2294_v39, %s2238_s28 }
 0x212   :  { %187 = vrot.lane.b32.xlu1 %v2294_v39, %s2235_s25 }
 0x216   :  { %207 = vrot.lane.b32.xlu1 %v2294_v39, %s2237_s27 }
 0x21a   :  { %191 = vrot.lane.b32.xlu1 %v2294_v39, %s2239_s29 }
 0x268   :  { %v198_v40 = vpop.permute.xlu1 %197 }
 0x26a   :  { %v200_v41 = vpop.permute.xlu0 %199 }
 0x26b   :  { %1983 = vmatpush3.xpose.msk.msra.mxu0 %vm235_vm2, %v200_v41 }
 0x26c   :  { %v202_v42 = vpop.permute.xlu1 %201  ;;  %1992 = vmatprep.subr.mxu0 %v2231_v34 }
 0x26e   :  { %v190_v47 = vpop.permute.xlu0 %189 }
 0x270   :  { %v186_v43 = vpop.permute.xlu1 %185 }
 0x272   :  { %v210_v50 = vpop.permute.xlu0 %209 }
 0x274   :  { %v206_v44 = vpop.permute.xlu1 %205 }
 0x276   :  { %v194_v52 = vpop.permute.xlu0 %193 }
 0x278   :  { %v196_v45 = vpop.permute.xlu1 %195 }
 0x279   :  { %1973 = vmatpush3.xpose.msk.msra.mxu1 %vm235_vm2, %v196_v45 }
 0x27a   :  { %1977 = vmatprep.subr.mxu1 %v2231_v34 }
 0x27c   :  { %1975 = vmatmul.mubr.msk.f32.vlgmr.msra.gmra.mxu1 %vm235_vm2, %v2294_v39  ;;  %v184_v46 = vpop.permute.xlu1 %183 }
 0x27d   :  { %1978 = vmatpush3.xpose.msk.msra.mxu1 %vm235_vm2, %v198_v40  ;;  %1985 = vmatmul.mubr.msk.f32.vlgmr.msra.gmra.mxu0 %vm235_vm2, %v184_v46 }
 0x27e   :  { %1979 = vmatprep.mubr.msk.f32.mxu1 %vm2234_vm1, %v2231_v34  ;;  %1987 = vmatprep.subr.mxu1 %v2231_v34 }
 0x27f   :  { %1994 = vmatprep.mubr.msk.f32.mxu0 %vm2234_vm1, %v2231_v34 }
 0x280   :  { %1980 = vmatmul.mubr.msk.f32.vlgmr.msra.gmra.mxu1 %vm235_vm2, %v2292_v37  ;;  %v204_v48 = vpop.permute.xlu1 %203 }
 0x281   :  { %1988 = vmatpush3.xpose.msk.msra.mxu1 %vm235_vm2, %v202_v42  ;;  %1993 = vmatpush3.xpose.msk.msra.mxu0 %vm235_vm2, %v204_v48 }
 0x282   :  { %1989 = vmatprep.mubr.msk.f32.mxu1 %vm2234_vm1, %v2231_v34  ;;  %1997 = vmatprep.subr.mxu1 %v2231_v34 }
 0x283   :  { %2002 = vmatprep.subr.mxu0 %v2231_v34 }
 0x284   :  { %1990 = vmatmul.mubr.msk.f32.vlgmr.msra.gmra.mxu1 %vm235_vm2, %v186_v43  ;;  %v188_v49 = vpop.permute.xlu1 %187 }
 0x285   :  { %1995 = vmatmul.mubr.msk.f32.vlgmr.msra.gmra.mxu0 %vm235_vm2, %v188_v49  ;;  %1998 = vmatpush3.xpose.msk.msra.mxu1 %vm235_vm2, %v206_v44 }
 0x286   :  { %1999 = vmatprep.mubr.msk.f32.mxu1 %vm2234_vm1, %v2231_v34  ;;  %2007 = vmatprep.subr.mxu1 %v2231_v34 }
 0x287   :  { %2004 = vmatprep.mubr.msk.f32.mxu0 %vm2234_vm1, %v2231_v34 }
 0x288   :  { %2000 = vmatmul.mubr.msk.f32.vlgmr.msra.gmra.mxu1 %vm235_vm2, %v190_v47  ;;  %v208_v51 = vpop.permute.xlu1 %207 }
 0x289   :  { %2003 = vmatpush3.xpose.msk.msra.mxu0 %vm235_vm2, %v208_v51  ;;  %2008 = vmatpush3.xpose.msk.msra.mxu1 %vm235_vm2, %v210_v50 }
 0x28a   :  { %2009 = vmatprep.mubr.msk.f32.mxu1 %vm2234_vm1, %v2231_v34  ;;  %2017 = vmatprep.subr.mxu1 %v2231_v34 }
 0x28b   :  { %2012 = vmatprep.subr.mxu0 %v2231_v34 }
 0x28c   :  { %2010 = vmatmul.mubr.msk.f32.vlgmr.msra.gmra.mxu1 %vm235_vm2, %v194_v52  ;;  %v192_v53 = vpop.permute.xlu1 %191 }
 0x28d   :  { %2005 = vmatmul.mubr.msk.f32.vlgmr.msra.gmra.mxu0 %vm235_vm2, %v192_v53  ;;  %2019 = vmatprep.mubr.msk.f32.mxu1 %vm2234_vm1, %v2231_v34 }
 0x28e   :  { %2014 = vmatprep.mubr.msk.f32.mxu0 %vm2234_vm1, %v2231_v34 }
 0x33c   :  { %v306_v54 = vpop.f32.mrf.mxu1 }
 0x33d   :  { %v454_v55 = vpop.f32.mrf.mxu0  ;;  %v828_v56 = vsel %vm235_vm2, %v306_v54, -inf }
 0x33e   :  { %829 = vmax.xlane.f32.xlu1 %v828_v56  ;;  %v1976_v57 = vpop.f32.mrf.mxu1  ;;  %v834_v3 = vsel %vm235_vm2, %v454_v55, -inf }
 0x33f   :  { %v1986_v58 = vpop.f32.mrf.mxu0 }
 0x340   :  { %v380_v59 = vpop.f32.mrf.mxu1 }
 0x341   :  { %v831_v60 = vsel %vm235_vm2, %v380_v59, -inf }
 0x342   :  { %832 = vmax.xlane.f32.xlu0 %v831_v60  ;;  %v1981_v61 = vpop.f32.mrf.mxu1 }
 0x344   :  { %v528_v62 = vpop.f32.mrf.mxu1 }
 0x345   :  { %v602_v63 = vpop.f32.mrf.mxu0  ;;  %v837_v2 = vsel %vm235_vm2, %v528_v62, -inf }
 0x346   :  { %838 = vmax.xlane.f32.xlu1 %v837_v2  ;;  %v1991_v4 = vpop.f32.mrf.mxu1  ;;  %835 = vmax.xlane.f32.xlu0 %v834_v3  ;;  %v840_v8 = vsel %vm235_vm2, %v602_v63, -inf }
 0x347   :  { %v1996_v5 = vpop.f32.mrf.mxu0 }
 0x348   :  { %v676_v6 = vpop.f32.mrf.mxu1 }
 0x349   :  { %v843_v7 = vsel %vm235_vm2, %v676_v6, -inf }
 0x34a   :  { %844 = vmax.xlane.f32.xlu1 %v843_v7  ;;  %v2001_v9 = vpop.f32.mrf.mxu1  ;;  %841 = vmax.xlane.f32.xlu0 %v840_v8 }
 0x34c   :  { %v824_v10 = vpop.f32.mrf.mxu1 }
 0x34d   :  { %v750_v11 = vpop.f32.mrf.mxu0  ;;  %v849_v12 = vsel %vm235_vm2, %v824_v10, -inf }
 0x34e   :  { %850 = vmax.xlane.f32.xlu1 %v849_v12  ;;  %v2011_v13 = vpop.f32.mrf.mxu1  ;;  %v846_v14 = vsel %vm235_vm2, %v750_v11, -inf }
 0x34f   :  { %847 = vmax.xlane.f32.xlu0 %v846_v14  ;;  %v2006_v15 = vpop.f32.mrf.mxu0 }
 0x35f   :  { %213 = vrot.lane.b32.xlu1 %v2292_v37, %s2240_s30 }
 0x363   :  { %217 = vrot.lane.b32.xlu1 %v2294_v39, %s2241_s3 }
 0x365   :  { %211 = vrot.lane.b32.xlu0 %v2294_v39, %s2240_s30 }
 0x367   :  { %223 = vrot.lane.b32.xlu1 %v2294_v39, %s2242_s4 }
 0x369   :  { %219 = vrot.lane.b32.xlu0 %v2292_v37, %s2241_s3 }
 0x36d   :  { %225 = vrot.lane.b32.xlu0 %v2292_v37, %s2242_s4 }
 0x3c7   :  { %v830_v16 = vpop.xlane.xlu1 %829 }
 0x3c8   :  { %v852_v17 = vsub.f32 %v306_v54, %v830_v16 }
 0x3ca   :  { %v860_v18 = vmul.f32 1.442695, %v852_v17 }
 0x3cb   :  { %v833_v19 = vpop.xlane.xlu0 %832 }
 0x3cc   :  { %2127 = vpow2.f32 %v860_v18  ;;  %v853_v20 = vsub.f32 %v380_v59, %v833_v19 }
 0x3ce   :  { %v862_v21 = vmul.f32 1.442695, %v853_v20 }
 0x3cf   :  { %v836_v22 = vpop.xlane.xlu0 %835  ;;  %v839_v23 = vpop.xlane.xlu1 %838 }
 0x3d0   :  { %2129 = vpow2.f32 %v862_v21  ;;  %v854_v24 = vsub.f32 %v454_v55, %v836_v22  ;;  %v855_v25 = vsub.f32 %v528_v62, %v839_v23 }
 0x3d2   :  { %v864_v26 = vmul.f32 1.442695, %v854_v24  ;;  %v866_v27 = vmul.f32 1.442695, %v855_v25 }
 0x3d3   :  { %v842_v28 = vpop.xlane.xlu0 %841  ;;  %v845_v29 = vpop.xlane.xlu1 %844 }
 0x3d4   :  { %2131 = vpow2.f32 %v864_v26  ;;  %v856_v30 = vsub.f32 %v602_v63, %v842_v28  ;;  %v857_v31 = vsub.f32 %v676_v6, %v845_v29  ;;  %v2416_v28 = vld [vmem:[#allocation5 + $0x40] sm:$0xff]  ;;  %v2419_v29 = vld [vmem:[#allocation5 + $0x38] sm:$0xff] }
 0x3d5   :  { %2133 = vpow2.f32 %v866_v27 }
 0x3d6   :  { %v868_v32 = vmul.f32 1.442695, %v856_v30  ;;  %v870_v33 = vmul.f32 1.442695, %v857_v31  ;;  %v48_v31 = vld [vmem:[#allocation5 + $0x30] sm:$0xff] }
 0x3d7   :  { %v851_v35 = vpop.xlane.xlu1 %850 }
 0x3d8   :  { %2135 = vpow2.f32 %v868_v32  ;;  %v859_v36 = vsub.f32 %v824_v10, %v851_v35  ;;  %v848_v38 = vpop.xlane.xlu0 %847 }
 0x3d9   :  { %v2128_v40 = vpop.eup %2127  ;;  %2137 = vpow2.f32 %v870_v33  ;;  %v858_v41 = vsub.f32 %v750_v11, %v848_v38  ;;  %v47_v33 = vld [vmem:[#allocation5 + $0x28] sm:$0xff] }
 0x3da   :  { %v874_v42 = vmul.f32 1.442695, %v859_v36  ;;  %v876_v43 = vsel %vm235_vm2, %v2128_v40, 0.0 }
 0x3db   :  { %v872_v44 = vmul.f32 1.442695, %v858_v41  ;;  %877 = vadd.xlane.f32.xlu0 %v876_v43  ;;  %v214_v45 = vpop.permute.xlu1 %213 }
 0x3dc   :  { %2139 = vpow2.f32 %v874_v42  ;;  %v212_v46 = vpop.permute.xlu0 %211  ;;  %2018 = vmatpush3.msra.mxu1 %v214_v45 }
 0x3dd   :  { %v2130_v47 = vpop.eup %2129  ;;  %2141 = vpow2.f32 %v872_v44  ;;  %2013 = vmatpush3.msra.mxu0 %v212_v46  ;;  %2027 = vmatprep.subr.mxu1 %v2231_v34 }
 0x3de   :  { %v879_v48 = vsel %vm235_vm2, %v2130_v47, 0.0  ;;  %2022 = vmatprep.subr.mxu0 %v2231_v34 }
 0x3df   :  { %880 = vadd.xlane.f32.xlu1 %v879_v48  ;;  %v218_v62 = vpop.permute.xlu1 %217 }
 0x3e0   :  { %v220_v61 = vpop.permute.xlu0 %219 }
 0x3e1   :  { %v2132_v49 = vpop.eup %2131 }
 0x3e2   :  { %v2134_v50 = vpop.eup %2133  ;;  %v882_v51 = vsel %vm235_vm2, %v2132_v49, 0.0 }
 0x3e3   :  { %883 = vadd.xlane.f32.xlu0 %v882_v51  ;;  %v885_v52 = vsel %vm235_vm2, %v2134_v50, 0.0  ;;  %v224_v2 = vpop.permute.xlu1 %223 }
 0x3e4   :  { %886 = vadd.xlane.f32.xlu1 %v885_v52  ;;  %v226_v63 = vpop.permute.xlu0 %225 }
 0x3e5   :  { %v2136_v53 = vpop.eup %2135 }
 0x3e6   :  { %v2138_v54 = vpop.eup %2137  ;;  %v888_v55 = vsel %vm235_vm2, %v2136_v53, 0.0 }
 0x3e7   :  { %889 = vadd.xlane.f32.xlu0 %v888_v55  ;;  %v891_v56 = vsel %vm235_vm2, %v2138_v54, 0.0 }
 0x3e8   :  { %892 = vadd.xlane.f32.xlu1 %v891_v56 }
 0x3e9   :  { %v2380_v57 = vpop.eup %2139 }
 0x3ea   :  { %v2382_v58 = vpop.eup %2141  ;;  %v897_v59 = vsel %vm235_vm2, %v2380_v57, 0.0 }
 0x3eb   :  { %v894_v60 = vsel %vm235_vm2, %v2382_v58, 0.0 }
 0x3ec   :  { %898 = vadd.xlane.f32.xlu1 %v897_v59  ;;  %895 = vadd.xlane.f32.xlu0 %v894_v60 }
 0x3fd   :  { %229 = vrot.lane.b32.xlu1 %v2294_v39, %s2243_s5 }
 0x402   :  { %231 = vrot.lane.b32.xlu0 %v2292_v37, %s2243_s5 }
 0x464   :  { %v878_v3 = vpop.xlane.xlu0 %877 }
 0x465   :  { %2143 = vrcp.f32 %v878_v3 }
 0x468   :  { %v881_v4 = vpop.xlane.xlu1 %880 }
 0x469   :  { %2145 = vrcp.f32 %v881_v4 }
 0x46c   :  { %v884_v5 = vpop.xlane.xlu0 %883 }
 0x46d   :  { %2147 = vrcp.f32 %v884_v5  ;;  %v887_v6 = vpop.xlane.xlu1 %886 }
 0x46e   :  { %2149 = vrcp.f32 %v887_v6 }
 0x470   :  { %v890_v7 = vpop.xlane.xlu0 %889 }
 0x471   :  { %2151 = vrcp.f32 %v890_v7  ;;  %v893_v8 = vpop.xlane.xlu1 %892 }
 0x472   :  { %v2144_v9 = vpop.eup %2143  ;;  %2153 = vrcp.f32 %v893_v8 }
 0x473   :  { %v908_v39 = vmul.f32 %v2144_v9, %v2128_v40 }
 0x475   :  { %v899_v10 = vpop.xlane.xlu1 %898  ;;  %2015 = vmatmul.mubr.msk.f32.vlgmr.msra.gmra.mxu0 %vm235_vm2, %v908_v39  ;;  %v896_v37 = vpop.xlane.xlu0 %895 }
 0x476   :  { %v2146_v11 = vpop.eup %2145  ;;  %2155 = vrcp.f32 %v899_v10  ;;  %2023 = vmatpush3.msra.mxu0 %v218_v62  ;;  %2024 = vmatprep.mubr.msk.f32.mxu0 %vm2234_vm1, %v2231_v34 }
 0x477   :  { %2157 = vrcp.f32 %v896_v37  ;;  %v909_v12 = vmul.f32 %v2146_v11, %v2130_v47  ;;  %2032 = vmatprep.subr.mxu0 %v2231_v34 }
 0x479   :  { %2020 = vmatmul.mubr.msk.f32.vlgmr.msra.gmra.mxu1 %vm235_vm2, %v909_v12  ;;  %v230_v21 = vpop.permute.xlu1 %229  ;;  %v232_v22 = vpop.permute.xlu0 %231 }
 0x47a   :  { %v2148_v13 = vpop.eup %2147  ;;  %2028 = vmatpush3.msra.mxu1 %v220_v61  ;;  %2029 = vmatprep.mubr.msk.f32.mxu1 %vm2234_vm1, %v2231_v34  ;;  %v1895_v61 = vld [vmem:[#allocation5 + $0x48] ss:$0 sm:$0xff] }
 0x47b   :  { %v2150_v14 = vpop.eup %2149  ;;  %2037 = vmatprep.subr.mxu1 %v2231_v34  ;;  %v910_v15 = vmul.f32 %v2148_v13, %v2132_v49 }
 0x47c   :  { %v911_v16 = vmul.f32 %v2150_v14, %v2134_v50 }
 0x47d   :  { %2025 = vmatmul.mubr.msk.f32.vlgmr.msra.gmra.mxu0 %vm235_vm2, %v910_v15 }
 0x47e   :  { %v2152_v17 = vpop.eup %2151  ;;  %2030 = vmatmul.mubr.msk.f32.vlgmr.msra.gmra.mxu1 %vm235_vm2, %v911_v16  ;;  %2033 = vmatpush3.msra.mxu0 %v224_v2 }
 0x47f   :  { %v2154_v18 = vpop.eup %2153  ;;  %2038 = vmatpush3.msra.mxu1 %v226_v63  ;;  %2034 = vmatprep.mubr.msk.f32.mxu0 %vm2234_vm1, %v2231_v34  ;;  %v912_v19 = vmul.f32 %v2152_v17, %v2136_v53 }
 0x480   :  { %2039 = vmatprep.mubr.msk.f32.mxu1 %vm2234_vm1, %v2231_v34  ;;  %2042 = vmatprep.subr.mxu0 %v2231_v34  ;;  %v913_v20 = vmul.f32 %v2154_v18, %v2138_v54 }
 0x481   :  { %2047 = vmatprep.subr.mxu1 %v2231_v34  ;;  %2035 = vmatmul.mubr.msk.f32.vlgmr.msra.gmra.mxu0 %vm235_vm2, %v912_v19 }
 0x482   :  { %2040 = vmatmul.mubr.msk.f32.vlgmr.msra.gmra.mxu1 %vm235_vm2, %v913_v20  ;;  %2043 = vmatpush3.msra.mxu0 %v230_v21  ;;  %v59_v20 = vld [vmem:[#allocation5 + $0x88] sm:$0xff]  ;;  %v58_v21 = vld [vmem:[#allocation5 + $0x80] sm:$0xff] }
 0x483   :  { %v2156_v23 = vpop.eup %2155  ;;  %2048 = vmatpush3.msra.mxu1 %v232_v22  ;;  %2049 = vmatprep.mubr.msk.f32.mxu1 %vm2234_vm1, %v2231_v34 }
 0x484   :  { %v2158_v24 = vpop.eup %2157  ;;  %2044 = vmatprep.mubr.msk.f32.mxu0 %vm2234_vm1, %v2231_v34  ;;  %v915_v25 = vmul.f32 %v2156_v23, %v2380_v57  ;;  %2052 = vmatprep.subr.mxu0 %v2416_v28 }
 0x485   :  { %v914_v26 = vmul.f32 %v2158_v24, %v2382_v58 }
 0x486   :  { %2050 = vmatmul.mubr.msk.f32.vlgmr.msra.gmra.mxu1 %vm235_vm2, %v915_v25 }
 0x487   :  { %2045 = vmatmul.mubr.msk.f32.vlgmr.msra.gmra.mxu0 %vm235_vm2, %v914_v26  ;;  %v57_v26 = vld [vmem:[#allocation5 + $0x78] sm:$0xff] }
 0x488   :  { %2053 = vmatpush3.msra.mxu0 %v2416_v28 }
 0x489   :  { %2054 = vmatprep.subr.mxu0 %v2419_v29 }
 0x48a   :  { %2055 = vmatpush3.msra.mxu0 %v2419_v29 }
 0x48b   :  { %2056 = vmatprep.subr.mxu0 %v48_v31 }
 0x48c   :  { %2057 = vmatpush3.msra.mxu0 %v48_v31 }
 0x48d   :  { %2058 = vmatprep.subr.mxu0 %v47_v33 }
 0x48e   :  { %2059 = vmatpush3.msra.mxu0 %v47_v33 }
 0x48f   :  { %2074 = vmatprep.subr.mxu0 %v59_v20 }
 0x535   :  { %v985_v27 = vpop.f32.mrf.mxu0 }
 0x537   :  { %v2016_v30 = vpop.f32.mrf.mxu0 }
 0x539   :  { %v1058_v34 = vpop.f32.mrf.mxu1 }
 0x53b   :  { %v2021_v32 = vpop.f32.mrf.mxu1 }
 0x53d   :  { %v1131_v35 = vpop.f32.mrf.mxu0 }
 0x53e   :  { %v1204_v36 = vpop.f32.mrf.mxu1  ;;  %1502 = vrot.lane.b32.xlu1 %v1131_v35, %s2229_s13 }
 0x53f   :  { %1504 = vrot.lane.b32.xlu0 %v1204_v36, %s2229_s13  ;;  %v2026_v38 = vpop.f32.mrf.mxu0 }
 0x540   :  { %v2031_v40 = vpop.f32.mrf.mxu1 }
 0x541   :  { %v1277_v41 = vpop.f32.mrf.mxu0  ;;  %v55_v40 = vld [vmem:[#allocation5 + $0x68] sm:$0xff] }
 0x542   :  { %v1350_v42 = vpop.f32.mrf.mxu1  ;;  %1510 = vrot.lane.b32.xlu1 %v1277_v41, %s2244_s6  ;;  %v54_v41 = vld [vmem:[#allocation5 + $0x60] sm:$0xff] }
 0x543   :  { %1512 = vrot.lane.b32.xlu0 %v1350_v42, %s2244_s6  ;;  %v2036_v43 = vpop.f32.mrf.mxu0  ;;  %v53_v42 = vld [vmem:[#allocation5 + $0x58] sm:$0xff] }
 0x544   :  { %v2041_v44 = vpop.f32.mrf.mxu1  ;;  %v52_v43 = vld [vmem:[#allocation5 + $0x50] sm:$0xff] }
 0x546   :  { %v1496_v45 = vpop.f32.mrf.mxu1 }
 0x547   :  { %1520 = vrot.lane.b32.xlu0 %v1496_v45, %s2245_s7  ;;  %v1423_v46 = vpop.f32.mrf.mxu0 }
 0x548   :  { %v2051_v47 = vpop.f32.mrf.mxu1  ;;  %1518 = vrot.lane.b32.xlu1 %v1423_v46, %s2245_s7 }
 0x549   :  { %v2046_v48 = vpop.f32.mrf.mxu0 }
 0x5b0   :  { %v1503_v49 = vpop.permute.xlu1 %1502 }
 0x5b1   :  { %v1505_v50 = vpop.permute.xlu0 %1504  ;;  %v1524_v53 = vsel %vm235_vm2, %v985_v27, %v1503_v49 }
 0x5b2   :  { %v1525_v55 = vsel %vm235_vm2, %v1058_v34, %v1505_v50 }
 0x5b4   :  { %v1511_v51 = vpop.permute.xlu1 %1510 }
 0x5b5   :  { %v1513_v52 = vpop.permute.xlu0 %1512  ;;  %v1527_v56 = vsel %vm1526_vm3, %v1524_v53, %v1511_v51  ;;  %v1898_v51 = vld [vmem:[#allocation5 + $0x90] ss:$0 sm:$0xff] }
 0x5b6   :  { %v1528_v58 = vsel %vm1526_vm3, %v1525_v55, %v1513_v52 }
 0x5b9   :  { %v1521_v54 = vpop.permute.xlu0 %1520 }
 0x5ba   :  { %v1519_v57 = vpop.permute.xlu1 %1518  ;;  %v1531_v60 = vsel %vm1529_vm4, %v1528_v58, %v1521_v54 }
 0x5bb   :  { %v1530_v59 = vsel %vm1529_vm4, %v1527_v56, %v1519_v57 }
 0x5bc   :  { %2060 = vmatprep.mubr.msk.f32.mxu0 %vm61_vm0, %v1530_v59 }
 0x5bd   :  { %2061 = vmatmul.mubr.msk.f32.vlgmr.msra.gmra.mxu0 %vm61_vm0, %v1531_v60 }
 0x5be   :  { %2075 = vmatpush3.msra.mxu0 %v59_v20 }
 0x5bf   :  { %2076 = vmatprep.subr.mxu0 %v58_v21 }
 0x5c0   :  { %2077 = vmatpush3.msra.mxu0 %v58_v21 }
 0x5c1   :  { %2078 = vmatprep.subr.mxu0 %v57_v26 }
 0x5c2   :  { %2079 = vmatpush3.msra.mxu0 %v57_v26 }
 0x67d   :  { %v2062_v62 = vpop.f32.mrf.mxu0 }
 0x67e   :  { %v1614_v63 = vadd.f32 %v2062_v62, %v2276_v1 }
 0x67f   :  { %v1604_v2 = vpop.f32.mrf.mxu0 }
 0x680   :  { %v2431_v3 = vadd.f32 %v1895_v61, %v1614_v63  ;;  %v1613_v4 = vadd.f32 %v1604_v2, %v2274_v0 }
 0x682   :  { %v2434_v5 = vadd.f32 %v1895_v61, %v1613_v4  ;;  %v1634_v7 = vsel %vm61_vm0, %v2431_v3, -inf  ;;  %v1622_v9 = vsel %vm61_vm0, %v2431_v3, inf }
 0x684   :  { %v1633_v6 = vsel %vm61_vm0, %v2434_v5, -inf  ;;  %v1621_v8 = vsel %vm61_vm0, %v2434_v5, inf }
 0x685   :  { %v1635_v1 = vmax.f32 %v1633_v6, %v1634_v7  ;;  %v1623_v39 = vmin.f32 %v1621_v8, %v1622_v9 }
 0x687   :  { %1636 = vmax.xlane.f32.xlu0 %v1635_v1  ;;  %1624 = vmin.xlane.f32.xlu1 %v1623_v39 }
 0x698   :  { %1663 = vrot.lane.b32.xlu1 %v2419_v29, %s2232_s23  ;;  %v56_v29 = vld [vmem:[#allocation5 + $0x70] sm:$0xff] }
 0x699   :  { %2080 = vmatprep.subr.mxu0 %v56_v29 }
 0x69a   :  { %2081 = vmatpush3.msra.mxu0 %v56_v29 }
 0x69b   :  { %2082 = vmatprep.subr.mxu0 %v55_v40 }
 0x69c   :  { %1661 = vrot.lane.b32.xlu1 %v48_v31, %s2232_s23  ;;  %2083 = vmatpush3.msra.mxu0 %v55_v40 }
 0x69d   :  { %1665 = vrot.lane.b32.xlu0 %v2416_v28, %s2232_s23  ;;  %2084 = vmatprep.subr.mxu0 %v54_v41 }
 0x69e   :  { %2085 = vmatpush3.msra.mxu0 %v54_v41 }
 0x69f   :  { %2086 = vmatprep.subr.mxu0 %v53_v42 }
 0x6a0   :  { %1672 = vrot.lane.b32.xlu1 %v1895_v61, %s2232_s23  ;;  %2087 = vmatpush3.msra.mxu0 %v53_v42 }
 0x6a1   :  { %1659 = vrot.lane.b32.xlu0 %v47_v33, %s2232_s23  ;;  %2088 = vmatprep.subr.mxu0 %v52_v43 }
 0x6a2   :  { %2089 = vmatpush3.msra.mxu0 %v52_v43 }
 0x710   :  { %v1637_v0 = vpop.xlane.xlu0 %1636  ;;  %v1625_v10 = vpop.xlane.xlu1 %1624 }
 0x711   :  { %v1638_v37 = vrot.slane %v1637_v0, 4  ;;  %v1626_v11 = vrot.slane %v1625_v10, 4 }
 0x713   :  { %v1639_v12 = vmax.f32 %v1637_v0, %v1638_v37  ;;  %v1627_v13 = vmin.f32 %v1625_v10, %v1626_v11 }
 0x714   :  { %v1666_v14 = vpop.permute.xlu0 %1665  ;;  %v1664_v15 = vpop.permute.xlu1 %1663 }
 0x715   :  { %v1640_v16 = vrot.slane %v1639_v12, 2  ;;  %v1628_v17 = vrot.slane %v1627_v13, 2  ;;  %2063 = vmatprep.subr.mxu1 %v1666_v14 }
 0x716   :  { %2064 = vmatpush3.msra.mxu1 %v1666_v14 }
 0x717   :  { %v1629_v18 = vmin.f32 %v1627_v13, %v1628_v17  ;;  %v1641_v19 = vmax.f32 %v1639_v12, %v1640_v16  ;;  %2065 = vmatprep.subr.mxu1 %v1664_v15 }
 0x718   :  { %2066 = vmatpush3.msra.mxu1 %v1664_v15  ;;  %v1662_v22 = vpop.permute.xlu1 %1661  ;;  %v1660_v23 = vpop.permute.xlu0 %1659 }
 0x719   :  { %v1630_v24 = vrot.slane %v1629_v18, 1  ;;  %v1642_v25 = vrot.slane %v1641_v19, 1  ;;  %2067 = vmatprep.subr.mxu1 %v1662_v22 }
 0x71a   :  { %2068 = vmatpush3.msra.mxu1 %v1662_v22 }
 0x71b   :  { %v1631_v27 = vmin.f32 %v1629_v18, %v1630_v24  ;;  %v1643_v28 = vmax.f32 %v1641_v19, %v1642_v25  ;;  %2069 = vmatprep.subr.mxu1 %v1660_v23 }
 0x71c   :  { %2070 = vmatpush3.msra.mxu1 %v1660_v23  ;;  %v1673_v44 = vpop.permute.xlu1 %1672 }
 0x71d   :  { %2099 = vpush %v1631_v27 }
 0x71e   :  { %2101 = vpush %v1643_v28 }
 0x74e   :  { %s2100_s8 = spop %2099 }
 0x74f   :  { %s2102_s9 = spop %2101  ;;  %v1645_v31 = vstv %s2100_s8 }
 0x750   :  { %s1648_s10 = ssub.f32 %s2102_s9, %s2100_s8  ;;  %v1646_v32 = vsub.f32 %v2434_v5, %v1645_v31  ;;  %v1647_v33 = vsub.f32 %v2431_v3, %v1645_v31 }
 0x752   :  { %v1649_v30 = vstv %s1648_s10 }
 0x753   :  { %2159 = vrcp.f32 %v1649_v30 }
 0x760   :  { %v2160_v34 = vpop.eup %2159 }
 0x761   :  { %2103 = vpush %v2160_v34 }
 0x792   :  { %s2104_s11 = spop %2103 }
 0x793   :  { %v1652_v35 = vstv %s2104_s11 }
 0x794   :  { %v1653_v36 = vmul.f32 %v1652_v35, %v1646_v32  ;;  %v1654_v38 = vmul.f32 %v1652_v35, %v1647_v33 }
 0x796   :  { %2071 = vmatprep.mubr.msk.f32.mxu1 %vm61_vm0, %v1653_v36 }
 0x797   :  { %2072 = vmatmul.mubr.msk.f32.vlgmr.msra.gmra.mxu1 %vm61_vm0, %v1654_v38 }
 0x857   :  { %v2073_v45 = vpop.f32.mrf.mxu1 }
 0x858   :  { %v1753_v46 = vadd.f32 %v2073_v45, %v1673_v44 }
 0x859   :  { %v1747_v47 = vpop.f32.mrf.mxu1 }
 0x85a   :  { %v1748_v48 = vadd.f32 %v1747_v47, %v1673_v44  ;;  %v1757_v50 = vmax.f32 %v1753_v46, 0.0 }
 0x85c   :  { %v1756_v49 = vmax.f32 %v1748_v48, 0.0 }
 0x85e   :  { %2090 = vmatprep.mubr.msk.f32.mxu0 %vm1762_vm5, %v1756_v49 }
 0x85f   :  { %2091 = vmatmul.mubr.msk.f32.vlgmr.msra.gmra.mxu0 %vm1762_vm5, %v1757_v50 }
 0x91f   :  { %v2092_v52 = vpop.f32.mrf.mxu0 }
 0x920   :  { %v1841_v53 = vadd.f32 %v2092_v52, %v1898_v51 }
 0x921   :  { %v1835_v54 = vpop.f32.mrf.mxu0 }
 0x922   :  { %v1845_v55 = vadd.f32 %v1841_v53, %v2431_v3  ;;  %v1836_v56 = vadd.f32 %v1898_v51, %v1835_v54 }
 0x924   :  { %1847 = vst.msk [vmem:[#allocation7 + $0x8] sm:$0xff] %vm61_vm0, %v1845_v55  ;;  %v1844_v57 = vadd.f32 %v1836_v56, %v2434_v5 }
 0x926   :  { %1846 = vst.msk [vmem:[#allocation7] sm:$0xff] %vm61_vm0, %v1844_v57 }
 0x927   :  { %2212 = shalt.err (!%p2209_p0)
}
 0x928   :  { %1859 = dma.vmem_to_hbm [thread:$0]  %s1854_s15, 256, %s2467_s2, [#allocation4], %s2228_s12, %s2228_s12, %s2229_s13  }
 0x929   :  { %2225 = dma.done.wait [#allocation4], 256  }
 0x92a   :  { %2226 = vsyncadd [#allocation4], 4294967040 }
 0x92b   :  { %1863 = vsyncpa [#allocation3], 1 }
 0x92c   :  { %1864 = vsyncpa [#allocation6], 1 }
 0x92d   :  { %1865 = vsyncpa [#allocation4], 1 }

</bundles_post_ra>
